<compile_context>
chip_gen: v7x
topology: tpu7x:2x2x1
jax: 0.10.0
libtpu: 0.0.40
codegen_flags: <defaults>
</compile_context>

<pallas_src>
import jax
import jax.numpy as jnp
import numpy as np
from jax.experimental import pallas as pl
from jax.experimental.pallas import tpu as pltpu


def _adaptive_windows(n_in: int, n_out: int):
    """PyTorch adaptive pooling window bounds: [floor(i*I/O), ceil((i+1)*I/O))."""
    return [((i * n_in) // n_out, -(-((i + 1) * n_in) // n_out)) for i in range(n_out)]


def _make_kernel(bb, ht, wt, th, tw, embed_dim, eps):
    L = ht * wt
    Mb = bb * L
    Tp = th * tw
    D = embed_dim
    uniform = (ht % th == 0) and (wt % tw == 0)
    h_win = _adaptive_windows(ht, th)
    w_win = _adaptive_windows(wt, tw)

    def kernel(tokens_ref, pos_ref, w_in_ref, pvec_ref, x_ref, pooled_ref):
        # packed (3, D) parameter block: patch-embed bias, LN gamma, LN beta.
        b_in = pvec_ref[0:1, :]
        gamma = pvec_ref[1:2, :]
        beta = pvec_ref[2:3, :]

        def ln(v):                                     # LN over last dim, f32
            mu = jnp.mean(v, axis=-1, keepdims=True)
            var = jnp.mean(jnp.square(v - mu), axis=-1, keepdims=True)
            return (v - mu) * jax.lax.rsqrt(var + eps) * gamma + beta

        # ---- patch embedding: one (Mb, d_in) x (d_in, D) MXU matmul ----------
        emb = jnp.dot(tokens_ref[...], w_in_ref[...],
                      preferred_element_type=jnp.float32) + b_in       # (Mb, D)

        # ---- add precomputed, batch-invariant position encoding --------------
        emb = (emb.reshape(bb, L, D) + pos_ref[...][None]).reshape(Mb, D)

        # ---- x tokens: one LN over the full slab + one lane-dense store ------
        x_ref[...] = ln(emb).astype(x_ref.dtype)

        # ---- adaptive max pool -> flat (bb*Tp, D), one LN, one dense store ---
        if uniform:
            hwin, wwin = ht // th, wt // tw
            v = emb.reshape(bb * th, hwin, tw, wwin, D)
            v = jnp.max(v, axis=3)                      # reduce w-window (sublane)
            acc = v[:, 0]                               # (bb*th, tw, D)
            for dh in range(1, hwin):                   # reduce h-window (max tree)
                acc = jnp.maximum(acc, v[:, dh])
            pooled = acc.reshape(bb * Tp, D)
        else:
            # TODO(synk): non-uniform adaptive windows fall back to a per-window
            # max tree; only hit when ht % th != 0 or wt % tw != 0.
            emb4 = emb.reshape(bb, ht, wt, D)
            rows = []
            for (h0, h1) in h_win:
                for (w0, w1) in w_win:
                    red = emb4[:, h0, w0, :]
                    for hh in range(h0, h1):
                        for ww in range(w0, w1):
                            if (hh, ww) != (h0, w0):
                                red = jnp.maximum(red, emb4[:, hh, ww, :])
                    rows.append(red[:, None, :])
            pooled = jnp.concatenate(rows, axis=1).reshape(bb * Tp, D)

        pooled_ref[...] = ln(pooled).astype(pooled_ref.dtype)

    return kernel


def adaptive_tokenizer_2d(x, params, patch_size, target_shape, eps=1e-5,
                          compute_dtype=jnp.float32, out_dtype=jnp.float32):
    """Forward of AdaptiveTokenizer2d. Returns (pooled, x_tokens).

    compute_dtype / out_dtype default to f32 (matches high_precision=True);
    bf16 is an opt-in bandwidth saver on v6e/v7x (accumulation stays f32).
    """
    B, C, H, W = x.shape
    ph, pw = patch_size
    ht, wt = H // ph, W // pw
    th, tw = target_shape[0] // ph, target_shape[1] // pw
    L, Tp = ht * wt, th * tw
    d_in = ph * pw * C
    D = params["w_in"].shape[0]

    # --- glue: NCHW -> (B*L, d_in) with feature order (hp, wp, c) ------------
    # TODO(synk): for very large H*W fold this relayout into the kernel's DMA
    # (memory_space=pl.ANY + per-tile rearrange) to save the extra HBM pass.
    tokens = x.reshape(B, C, ht, ph, wt, pw)
    tokens = jnp.transpose(tokens, (0, 2, 4, 3, 5, 1)).reshape(B * L, d_in)
    tokens = tokens.astype(compute_dtype)

    # --- batch-invariant pos-enc MLP computed ONCE here (tiny; hoisted so the
    #     kernel grid axis can be "parallel" / megacore-sharded on v7x) --------
    hs = jnp.linspace(-1.0, 1.0, ht, dtype=jnp.float32)
    ws = jnp.linspace(-1.0, 1.0, wt, dtype=jnp.float32)
    gh, gw = jnp.meshgrid(hs, ws, indexing="ij")
    coords = jnp.stack([gh, gw], axis=-1).reshape(L, 2)
    hid = coords @ params["w1"].T.astype(jnp.float32) + params["b1"].astype(jnp.float32)
    hid = jnp.square(jnp.maximum(hid, 0.0))                    # relu^2
    pos = (hid @ params["w2"].T.astype(jnp.float32)
           + params["b2"].astype(jnp.float32))                 # (L, D)

    # --- weights pre-transposed (K, N); three (D,) vectors packed into (3, D) -
    w_in_t = params["w_in"].T.astype(compute_dtype)            # (d_in, D)
    pvec = jnp.stack([params["b_in"], params["w_norm"], params["b_norm"]],
                     axis=0).astype(jnp.float32)               # (3, D)

    # --- rows per grid step from an explicit VMEM budget ----------------------
    itok = jnp.dtype(compute_dtype).itemsize
    iout = jnp.dtype(out_dtype).itemsize
    # per token row: tokens in + x out + amortized pooled out + f32 intermediate
    row_bytes = d_in * itok + D * iout + (Tp * D * iout + L - 1) // L + D * 4
    slab_budget = 8 << 20        # pipelined-slab budget; safe on v5e/v6e/v7x
    bb = max(1, min(B, slab_budget // (2 * row_bytes * L)))
    nsteps = -(-B // bb)
    if nsteps > 1:               # keep flat output blocks (8,128)-tileable
        while bb > 1 and ((bb * L) % 8 or (bb * Tp) % 8):
            bb -= 1
        if (bb * L) % 8 or (bb * Tp) % 8:
            bb = B               # TODO(synk): ragged tiny shapes -> single step
        nsteps = -(-B // bb)
    B_pad = nsteps * bb
    Mb = bb * L
    if B_pad != B:               # remainder step: pad rows, slice outputs below
        tokens = jnp.pad(tokens, ((0, (B_pad - B) * L), (0, 0)))
    # TODO(synk): for bb == 1 with very large L the slab may still exceed the
    # budget; would need an inner row-tiling of the per-image matmul.

    kernel = _make_kernel(bb, ht, wt, th, tw, D, eps)

    def const_spec(shape):
        nd = len(shape)
        return pl.BlockSpec(shape, lambda i, _nd=nd: (0,) * _nd)

    grid_spec = pltpu.PrefetchScalarGridSpec(
        num_scalar_prefetch=0,
        grid=(nsteps,),
        in_specs=[
            pl.BlockSpec((Mb, d_in), lambda i: (i, 0)),        # token row slab
            const_spec((L, D)),                                # pos encoding
            const_spec((d_in, D)),                             # w_in^T
            const_spec((3, D)),                                # packed b_in/ln params
        ],
        out_specs=[
            pl.BlockSpec((Mb, D), lambda i: (i, 0)),           # x tokens (flat)
            pl.BlockSpec((bb * Tp, D), lambda i: (i, 0)),      # pooled (flat)
        ],
    )

    est = 2 * (Mb * d_in * itok + Mb * D * iout + bb * Tp * D * iout) \
        + (L * D + d_in * D + 8 * D) * 4
    vmem_limit = int(min(max(2 * est, 32 << 20), 48 << 20))

    x_flat, pooled_flat = pl.pallas_call(
        kernel,
        out_shape=(
            jax.ShapeDtypeStruct((B_pad * L, D), out_dtype),
            jax.ShapeDtypeStruct((B_pad * Tp, D), out_dtype),
        ),
        grid_spec=grid_spec,
        compiler_params=pltpu.CompilerParams(
            dimension_semantics=("parallel",),
            vmem_limit_bytes=vmem_limit),
    )(tokens, pos, w_in_t, pvec)

    pooled = pooled_flat.reshape(B_pad, Tp, D)[:B]
    x_tok = x_flat.reshape(B_pad, L, D)[:B]
    return pooled, x_tok


def reference_forward(x, params, patch_size, target_shape, eps=1e-5):
    """Pure-JAX reference mirroring the PyTorch forward."""
    B, C, H, W = x.shape
    ph, pw = patch_size
    ht, wt = H // ph, W // pw
    th, tw = target_shape[0] // ph, target_shape[1] // pw
    L = ht * wt
    D = params["w_in"].shape[0]

    tokens = x.reshape(B, C, ht, ph, wt, pw)
    tokens = jnp.transpose(tokens, (0, 2, 4, 3, 5, 1)).reshape(B, L, ph * pw * C)
    emb = tokens.astype(jnp.float32) @ params["w_in"].T + params["b_in"]

    hs = jnp.linspace(-1.0, 1.0, ht, dtype=jnp.float32)
    ws = jnp.linspace(-1.0, 1.0, wt, dtype=jnp.float32)
    gh, gw = jnp.meshgrid(hs, ws, indexing="ij")
    coords = jnp.stack([gh, gw], axis=-1).reshape(L, 2)
    hid = jnp.square(jnp.maximum(coords @ params["w1"].T + params["b1"], 0.0))
    pos = hid @ params["w2"].T + params["b2"]
    emb = emb + pos[None]

    emb4 = emb.reshape(B, ht, wt, D)
    rows = []
    for (h0, h1) in _adaptive_windows(ht, th):
        for (w0, w1) in _adaptive_windows(wt, tw):
            rows.append(jnp.max(emb4[:, h0:h1, w0:w1, :], axis=(1, 2)))
    pooled = jnp.stack(rows, axis=1)

    def ln(v):
        mu = jnp.mean(v, axis=-1, keepdims=True)
        var = jnp.mean(jnp.square(v - mu), axis=-1, keepdims=True)
        return (v - mu) * jax.lax.rsqrt(var + eps) * params["w_norm"] + params["b_norm"]

    return ln(pooled), ln(emb)


if __name__ == "__main__":
    # Module config: in_channels=4, embed_dim=128, patch_size=4,
    # target_shape=(8, 8) -> target_tokenized_shape=(2, 2), pool_type=MAX.
    # Demo shapes are TPU-friendly: one grid step with M = B*L = 128 MXU rows,
    # D = 128 -> all output stores are full (8,128)-tile lane-dense stores.
    B, C, H, W = 2, 4, 32, 32
    patch_size = (4, 4)
    target_shape = (8, 8)
    D = 128
    d_in = patch_size[0] * patch_size[1] * C          # 64
    hidden = 2 * D                                    # pos-enc hidden width (synthetic)

    key = jax.random.PRNGKey(0)
    ks = jax.random.split(key, 8)
    x = jax.random.normal(ks[0], (B, C, H, W), jnp.float32)

    # Deterministic synthetic parameter init (shapes from __init__).
    params = dict(
        w_in=0.02 * jax.random.normal(ks[1], (D, d_in), jnp.float32),
        b_in=0.02 * jax.random.normal(ks[2], (D,), jnp.float32),
        w_norm=jnp.ones((D,), jnp.float32)
        + 0.1 * jax.random.normal(ks[3], (D,), jnp.float32),
        b_norm=0.1 * jax.random.normal(ks[4], (D,), jnp.float32),
        w1=0.5 * jax.random.normal(ks[5], (hidden, 2), jnp.float32),
        b1=jnp.zeros((hidden,), jnp.float32),
        w2=0.02 * jax.random.normal(ks[6], (D, hidden), jnp.float32),
        b2=jnp.zeros((D,), jnp.float32),
    )
    # TODO(synk): pos-enc dropout is a no-op in eval mode (training=False) and
    # is therefore omitted.

    pooled, x_tok = adaptive_tokenizer_2d(x, params, patch_size, target_shape)
    jax.block_until_ready((pooled, x_tok))

    ref_pooled, ref_x = reference_forward(x, params, patch_size, target_shape)
    np.testing.assert_allclose(np.asarray(pooled), np.asarray(ref_pooled),
                               rtol=5e-3, atol=5e-3)
    np.testing.assert_allclose(np.asarray(x_tok), np.asarray(ref_x),
                               rtol=5e-3, atol=5e-3)

    th, tw = target_shape[0] // patch_size[0], target_shape[1] // patch_size[1]
    assert pooled.shape == (B, th * tw, D)
    assert x_tok.shape == (B, (H // patch_size[0]) * (W // patch_size[1]), D)
    print("KERNEL_OK")
</pallas_src>

<mosaic_0001>
module attributes {stable_mosaic.version = 11 : i64} {
  func.func @kernel(%arg0: i32, %arg1: memref<128x64xf32, #tpu.memory_space<vmem>>, %arg2: memref<64x128xf32, #tpu.memory_space<vmem>>, %arg3: memref<64x128xf32, #tpu.memory_space<vmem>>, %arg4: memref<3x128xf32, #tpu.memory_space<vmem>>, %arg5: memref<128x128xf32, #tpu.memory_space<vmem>>, %arg6: memref<8x128xf32, #tpu.memory_space<vmem>>) attributes {dimension_semantics = [#tpu.dimension_semantics<parallel>], iteration_bounds = array<i64: 1>, scalar_prefetch = 0 : i64, scratch_operands = 0 : i64, tpu.core_type = #tpu.core_type<tc>, window_params = [{transform_indices = @transform_0, window_bounds = array<i64: 128, 64>}, {pipeline_mode = #tpu.pipeline_mode<synchronous>, transform_indices = @transform_1, window_bounds = array<i64: 64, 128>}, {pipeline_mode = #tpu.pipeline_mode<synchronous>, transform_indices = @transform_2, window_bounds = array<i64: 64, 128>}, {pipeline_mode = #tpu.pipeline_mode<synchronous>, transform_indices = @transform_3, window_bounds = array<i64: 3, 128>}, {transform_indices = @transform_4, window_bounds = array<i64: 128, 128>}, {transform_indices = @transform_5, window_bounds = array<i64: 8, 128>}]} {
    %c0 = arith.constant 0 : index
    %c0_0 = arith.constant 0 : index
    %0 = vector.load %arg4[%c0, %c0_0] : memref<3x128xf32, #tpu.memory_space<vmem>>, vector<1x128xf32>
    %c1 = arith.constant 1 : index
    %c0_1 = arith.constant 0 : index
    %1 = vector.load %arg4[%c1, %c0_1] : memref<3x128xf32, #tpu.memory_space<vmem>>, vector<1x128xf32>
    %c2 = arith.constant 2 : index
    %c0_2 = arith.constant 0 : index
    %2 = vector.load %arg4[%c2, %c0_2] : memref<3x128xf32, #tpu.memory_space<vmem>>, vector<1x128xf32>
    %c0_3 = arith.constant 0 : index
    %c0_4 = arith.constant 0 : index
    %3 = vector.load %arg1[%c0_3, %c0_4] : memref<128x64xf32, #tpu.memory_space<vmem>>, vector<128x64xf32>
    %c0_5 = arith.constant 0 : index
    %c0_6 = arith.constant 0 : index
    %4 = vector.load %arg3[%c0_5, %c0_6] : memref<64x128xf32, #tpu.memory_space<vmem>>, vector<64x128xf32>
    %cst = arith.constant dense<0.000000e+00> : vector<128x128xf32>
    %5 = tpu.matmul %3, %4, %cst {dimension_numbers = #tpu.dot_dimension_numbers<[1], [0], [0], [1], [0, 0, 1, 1], [], []>} : vector<128x64xf32>, vector<64x128xf32>, vector<128x128xf32> -> vector<128x128xf32>
    %6 = vector.broadcast %0 : vector<1x128xf32> to vector<128x128xf32>
    %7 = arith.addf %5, %6 : vector<128x128xf32>
    %8 = vector.shape_cast %7 : vector<128x128xf32> to vector<2x64x128xf32>
    %c0_7 = arith.constant 0 : index
    %c0_8 = arith.constant 0 : index
    %9 = vector.load %arg2[%c0_7, %c0_8] : memref<64x128xf32, #tpu.memory_space<vmem>>, vector<64x128xf32>
    %10 = vector.shape_cast %9 : vector<64x128xf32> to vector<1x64x128xf32>
    %11 = vector.broadcast %10 : vector<1x64x128xf32> to vector<2x64x128xf32>
    %12 = arith.addf %8, %11 : vector<2x64x128xf32>
    %13 = vector.shape_cast %12 : vector<2x64x128xf32> to vector<128x128xf32>
    %cst_9 = arith.constant dense<0.000000e+00> : vector<128xf32>
    %14 = vector.multi_reduction <add>, %13, %cst_9 [1] : vector<128x128xf32> to vector<128xf32>
    %15 = vector.shape_cast %14 : vector<128xf32> to vector<128x1xf32>
    %cst_10 = arith.constant 1.280000e+02 : f32
    %16 = vector.broadcast %cst_10 : f32 to vector<128x1xf32>
    %17 = arith.divf %15, %16 : vector<128x1xf32>
    %18 = vector.broadcast %17 : vector<128x1xf32> to vector<128x128xf32>
    %19 = arith.subf %13, %18 : vector<128x128xf32>
    %20 = arith.mulf %19, %19 : vector<128x128xf32>
    %cst_11 = arith.constant dense<0.000000e+00> : vector<128xf32>
    %21 = vector.multi_reduction <add>, %20, %cst_11 [1] : vector<128x128xf32> to vector<128xf32>
    %22 = vector.shape_cast %21 : vector<128xf32> to vector<128x1xf32>
    %cst_12 = arith.constant 1.280000e+02 : f32
    %23 = vector.broadcast %cst_12 : f32 to vector<128x1xf32>
    %24 = arith.divf %22, %23 : vector<128x1xf32>
    %25 = vector.broadcast %17 : vector<128x1xf32> to vector<128x128xf32>
    %26 = arith.subf %13, %25 : vector<128x128xf32>
    %cst_13 = arith.constant 9.99999974E-6 : f32
    %27 = vector.broadcast %cst_13 : f32 to vector<128x1xf32>
    %28 = arith.addf %24, %27 : vector<128x1xf32>
    %29 = math.rsqrt %28 : vector<128x1xf32>
    %30 = vector.broadcast %29 : vector<128x1xf32> to vector<128x128xf32>
    %31 = arith.mulf %26, %30 : vector<128x128xf32>
    %32 = vector.broadcast %1 : vector<1x128xf32> to vector<128x128xf32>
    %33 = arith.mulf %31, %32 : vector<128x128xf32>
    %34 = vector.broadcast %2 : vector<1x128xf32> to vector<128x128xf32>
    %35 = arith.addf %33, %34 : vector<128x128xf32>
    %c0_14 = arith.constant 0 : index
    %c0_15 = arith.constant 0 : index
    %36 = vector.load %arg5[%c0_14, %c0_15] : memref<128x128xf32, #tpu.memory_space<vmem>>, vector<128x128xf32>
    tpu.vector_store %arg5[%c0_14, %c0_15], %35 {strides = array<i32>} : memref<128x128xf32, #tpu.memory_space<vmem>>, vector<128x128xf32>,
    %37 = vector.shape_cast %13 : vector<128x128xf32> to vector<4x4x2x4x128xf32>
    %cst_16 = arith.constant dense<0xFF800000> : vector<4x4x2x128xf32>
    %38 = vector.multi_reduction <maximumf>, %37, %cst_16 [3] : vector<4x4x2x4x128xf32> to vector<4x4x2x128xf32>
    %39 = vector.extract_strided_slice %38 {offsets = [0, 0, 0, 0], sizes = [4, 1, 2, 128], strides = [1, 1, 1, 1]} : vector<4x4x2x128xf32> to vector<4x1x2x128xf32>
    %40 = vector.shape_cast %39 : vector<4x1x2x128xf32> to vector<4x2x128xf32>
    %41 = vector.extract_strided_slice %38 {offsets = [0, 1, 0, 0], sizes = [4, 1, 2, 128], strides = [1, 1, 1, 1]} : vector<4x4x2x128xf32> to vector<4x1x2x128xf32>
    %42 = vector.shape_cast %41 : vector<4x1x2x128xf32> to vector<4x2x128xf32>
    %43 = arith.maximumf %40, %42 : vector<4x2x128xf32>
    %44 = vector.extract_strided_slice %38 {offsets = [0, 2, 0, 0], sizes = [4, 1, 2, 128], strides = [1, 1, 1, 1]} : vector<4x4x2x128xf32> to vector<4x1x2x128xf32>
    %45 = vector.shape_cast %44 : vector<4x1x2x128xf32> to vector<4x2x128xf32>
    %46 = arith.maximumf %43, %45 : vector<4x2x128xf32>
    %47 = vector.extract_strided_slice %38 {offsets = [0, 3, 0, 0], sizes = [4, 1, 2, 128], strides = [1, 1, 1, 1]} : vector<4x4x2x128xf32> to vector<4x1x2x128xf32>
    %48 = vector.shape_cast %47 : vector<4x1x2x128xf32> to vector<4x2x128xf32>
    %49 = arith.maximumf %46, %48 : vector<4x2x128xf32>
    %50 = vector.shape_cast %49 : vector<4x2x128xf32> to vector<8x128xf32>
    %cst_17 = arith.constant dense<0.000000e+00> : vector<8xf32>
    %51 = vector.multi_reduction <add>, %50, %cst_17 [1] : vector<8x128xf32> to vector<8xf32>
    %52 = vector.shape_cast %51 : vector<8xf32> to vector<8x1xf32>
    %cst_18 = arith.constant 1.280000e+02 : f32
    %53 = vector.broadcast %cst_18 : f32 to vector<8x1xf32>
    %54 = arith.divf %52, %53 : vector<8x1xf32>
    %55 = vector.broadcast %54 : vector<8x1xf32> to vector<8x128xf32>
    %56 = arith.subf %50, %55 : vector<8x128xf32>
    %57 = arith.mulf %56, %56 : vector<8x128xf32>
    %cst_19 = arith.constant dense<0.000000e+00> : vector<8xf32>
    %58 = vector.multi_reduction <add>, %57, %cst_19 [1] : vector<8x128xf32> to vector<8xf32>
    %59 = vector.shape_cast %58 : vector<8xf32> to vector<8x1xf32>
    %cst_20 = arith.constant 1.280000e+02 : f32
    %60 = vector.broadcast %cst_20 : f32 to vector<8x1xf32>
    %61 = arith.divf %59, %60 : vector<8x1xf32>
    %62 = vector.broadcast %54 : vector<8x1xf32> to vector<8x128xf32>
    %63 = arith.subf %50, %62 : vector<8x128xf32>
    %cst_21 = arith.constant 9.99999974E-6 : f32
    %64 = vector.broadcast %cst_21 : f32 to vector<8x1xf32>
    %65 = arith.addf %61, %64 : vector<8x1xf32>
    %66 = math.rsqrt %65 : vector<8x1xf32>
    %67 = vector.broadcast %66 : vector<8x1xf32> to vector<8x128xf32>
    %68 = arith.mulf %63, %67 : vector<8x128xf32>
    %69 = vector.broadcast %1 : vector<1x128xf32> to vector<8x128xf32>
    %70 = arith.mulf %68, %69 : vector<8x128xf32>
    %71 = vector.broadcast %2 : vector<1x128xf32> to vector<8x128xf32>
    %72 = arith.addf %70, %71 : vector<8x128xf32>
    %c0_22 = arith.constant 0 : index
    %c0_23 = arith.constant 0 : index
    %73 = vector.load %arg6[%c0_22, %c0_23] : memref<8x128xf32, #tpu.memory_space<vmem>>, vector<8x128xf32>
    tpu.vector_store %arg6[%c0_22, %c0_23], %72 {strides = array<i32>} : memref<8x128xf32, #tpu.memory_space<vmem>>, vector<8x128xf32>,
    return
  }
  func.func @transform_0(%arg0: i32) -> (i32, i32) {
    %c0_i32 = arith.constant 0 : i32
    %c0_i32_0 = arith.constant 0 : i32
    return %arg0, %c0_i32 : i32, i32
  }
  func.func @transform_1(%arg0: i32) -> (i32, i32) {
    %c0_i32 = arith.constant 0 : i32
    %c0_i32_0 = arith.constant 0 : i32
    %c0_i32_1 = arith.constant 0 : i32
    return %c0_i32, %c0_i32_0 : i32, i32
  }
  func.func @transform_2(%arg0: i32) -> (i32, i32) {
    %c0_i32 = arith.constant 0 : i32
    %c0_i32_0 = arith.constant 0 : i32
    %c0_i32_1 = arith.constant 0 : i32
    return %c0_i32, %c0_i32_0 : i32, i32
  }
  func.func @transform_3(%arg0: i32) -> (i32, i32) {
    %c0_i32 = arith.constant 0 : i32
    %c0_i32_0 = arith.constant 0 : i32
    %c0_i32_1 = arith.constant 0 : i32
    return %c0_i32, %c0_i32_0 : i32, i32
  }
  func.func @transform_4(%arg0: i32) -> (i32, i32) {
    %c0_i32 = arith.constant 0 : i32
    %c0_i32_0 = arith.constant 0 : i32
    return %arg0, %c0_i32 : i32, i32
  }
  func.func @transform_5(%arg0: i32) -> (i32, i32) {
    %c0_i32 = arith.constant 0 : i32
    %c0_i32_0 = arith.constant 0 : i32
    return %arg0, %c0_i32 : i32, i32
  }
}

</mosaic_0001>

<bundles_post_ra>
// kernel: tpu_custom_call.1
= control target key start
LH: loop header
LB: loop body
LE: loop exit
PB: predicated region body
PF: predicated region fallthrough
CT: control target
= control target key end

     0   :  { %11 = vsyncpa [#allocation3], 0  ;;  %vm52_vm0 = vcmask 523264   ;;  %s1859_s0 = inlined_call_operand.vmem [shape: f32[128,64], index: 0, kind: input, shape index: {}]   ;;  %s1860_s1 = inlined_call_operand.vmem [shape: f32[64,128], index: 1, kind: input, shape index: {}]   ;;  %s1861_s2 = inlined_call_operand.vmem [shape: f32[64,128], index: 2, kind: input, shape index: {}]   ;;  %s1862_s3 = inlined_call_operand.vmem [shape: f32[3,128], index: 3, kind: input, shape index: {}]   ;;  %s1863_s4 = inlined_call_operand.hbm [shape: f32[128,128], index: 4, kind: output, shape index: {0}]   ;;  %s1864_s5 = inlined_call_operand.hbm [shape: f32[8,128], index: 5, kind: output, shape index: {1}]  }
   0x1   :  { %v40_v0 = vld [vmem:[%s1861_s2] sm:$0xff]  ;;  %v41_v1 = vld [vmem:[%s1861_s2 + $0x8] sm:$0xff]  ;;  %v42_v2 = vld [vmem:[%s1861_s2 + $0x10] sm:$0xff] }
   0x2   :  { %v1063_v3 = vpack.c.bf16 %v41_v1, %v40_v0  ;;  %v43_v4 = vld [vmem:[%s1861_s2 + $0x18] sm:$0xff]  ;;  %v44_v6 = vld [vmem:[%s1861_s2 + $0x20] sm:$0xff]  ;;  %v45_v7 = vld [vmem:[%s1861_s2 + $0x28] sm:$0xff] }
   0x3   :  { %v1067_v5 = vpack.c.bf16 %v43_v4, %v42_v2  ;;  %v24_v8 = vld [vmem:[%s1859_s0] sm:$0xff]  ;;  %v1071_v10 = vpack.c.bf16 %v45_v7, %v44_v6  ;;  %v46_v11 = vld [vmem:[%s1861_s2 + $0x30] sm:$0xff]  ;;  %v47_v12 = vld [vmem:[%s1861_s2 + $0x38] sm:$0xff] }
   0x4   :  { %1064 = vmatprep.subr.bf16.mxu0 %v1063_v3  ;;  %1079 = vmatprep.subr.bf16.mxu1 %v1063_v3  ;;  %v32_v9 = vld [vmem:[%s1859_s0 + $0x40] sm:$0xff] }
   0x5   :  { %1066 = vmatpush3.bf16.msra.mxu0 %v1063_v3  ;;  %1083 = vmatpush3.bf16.msra.mxu1 %v1063_v3 }
   0x6   :  { %1068 = vmatprep.subr.bf16.mxu0 %v1067_v5  ;;  %1080 = vmatprep.subr.bf16.mxu1 %v1067_v5 }
   0x7   :  { %1039 = vmatprep.mubr.msk.f32.mxu0 %vm52_vm0, %v24_v8  ;;  %1051 = vmatprep.mubr.msk.f32.mxu1 %vm52_vm0, %v32_v9 }
   0x9   :  { %1070 = vmatpush3.bf16.msra.mxu0 %v1067_v5  ;;  %1084 = vmatpush3.bf16.msra.mxu1 %v1067_v5 }
   0xa   :  { %12 = vsyncpa [#allocation5], 0  ;;  %1072 = vmatprep.subr.bf16.mxu0 %v1071_v10  ;;  %1081 = vmatprep.subr.bf16.mxu1 %v1071_v10  ;;  %v1075_v13 = vpack.c.bf16 %v47_v12, %v46_v11  ;;  %v25_v14 = vld [vmem:[%s1859_s0 + $0x8] sm:$0xff]  ;;  %v26_v16 = vld [vmem:[%s1859_s0 + $0x10] sm:$0xff]  ;;  %vm551_vm1 = vcmask 1043456   ;;  %vm808_vm2 = vcmask 1041409  }
   0xb   :  { %v33_v15 = vld [vmem:[%s1859_s0 + $0x48] sm:$0xff]  ;;  %v34_v17 = vld [vmem:[%s1859_s0 + $0x50] sm:$0xff]  ;;  %v27_v18 = vld [vmem:[%s1859_s0 + $0x18] sm:$0xff]  ;;  %vm810_vm3 = vcmask 1042434   ;;  %vm812_vm4 = vcmask 1043459   ;;  %vm814_vm5 = vcmask 1044484  }
   0xc   :  { %v35_v19 = vld [vmem:[%s1859_s0 + $0x58] sm:$0xff]  ;;  %v28_v20 = vld [vmem:[%s1859_s0 + $0x20] sm:$0xff]  ;;  %v29_v22 = vld [vmem:[%s1859_s0 + $0x28] sm:$0xff]  ;;  %vm816_vm6 = vcmask 1045509   ;;  %vm818_vm7 = vcmask 1046534   ;;  %vm820_vm8 = vcmask 1047559  }
   0xd   :  { %1074 = vmatpush3.bf16.msra.mxu0 %v1071_v10  ;;  %1085 = vmatpush3.bf16.msra.mxu1 %v1071_v10  ;;  %v36_v21 = vld [vmem:[%s1859_s0 + $0x60] sm:$0xff]  ;;  %v37_v23 = vld [vmem:[%s1859_s0 + $0x68] sm:$0xff]  ;;  %v30_v24 = vld [vmem:[%s1859_s0 + $0x30] sm:$0xff]  ;;  %s1174_s10 = smov [#allocation4]  }
   0xe   :  { %1076 = vmatprep.subr.bf16.mxu0 %v1075_v13  ;;  %1082 = vmatprep.subr.bf16.mxu1 %v1075_v13  ;;  %v38_v25 = vld [vmem:[%s1859_s0 + $0x70] sm:$0xff]  ;;  %v31_v26 = vld [vmem:[%s1859_s0 + $0x38] sm:$0xff]  ;;  %v1298_v28 = vld [vmem:[%s1862_s3] ss:$0 sm:$0xff]  ;;  %s968_s11 = sshll.u32 %s1174_s10, 4  ;;  %s1828_s11 = int_to_ptr.vmem [resolvable:$true] %s968_s11 }
   0xf   :  { %v39_v27 = vld [vmem:[%s1859_s0 + $0x78] sm:$0xff]  ;;  %v247_v30 = vld [vmem:[%s1860_s1 + $0x8] sm:$0xff]  ;;  %v246_v35 = vld [vmem:[%s1860_s1] sm:$0xff] }
  0x11   :  { %1078 = vmatpush3.bf16.msra.mxu0 %v1075_v13  ;;  %1086 = vmatpush3.bf16.msra.mxu1 %v1075_v13 }
  0x14   :  { %1040 = vmatmul.mubr.msk.f32.vlgmr.msra.gmra.mrb[0].mxu0 %vm52_vm0, %v25_v14  ;;  %1052 = vmatmul.mubr.msk.f32.vlgmr.msra.gmra.mrb[0].mxu1 %vm52_vm0, %v33_v15 }
  0x15   :  { %1042 = vmatprep.mubr.msk.f32.mxu0 %vm52_vm0, %v26_v16  ;;  %1054 = vmatprep.mubr.msk.f32.mxu1 %vm52_vm0, %v34_v17 }
  0x18   :  { %1043 = vmatmul.mubr.msk.f32.gmra.mrb[2].mxu0 %vm52_vm0, %v27_v18  ;;  %1055 = vmatmul.mubr.msk.f32.gmra.mrb[2].mxu1 %vm52_vm0, %v35_v19 }
  0x19   :  { %1045 = vmatprep.mubr.msk.f32.mxu0 %vm52_vm0, %v28_v20  ;;  %1057 = vmatprep.mubr.msk.f32.mxu1 %vm52_vm0, %v36_v21 }
  0x1c   :  { %1046 = vmatmul.mubr.msk.f32.gmra.mrb[4].mxu0 %vm52_vm0, %v29_v22  ;;  %1058 = vmatmul.mubr.msk.f32.gmra.mrb[4].mxu1 %vm52_vm0, %v37_v23 }
  0x1d   :  { %1048 = vmatprep.mubr.msk.f32.mxu0 %vm52_vm0, %v30_v24  ;;  %1060 = vmatprep.mubr.msk.f32.mxu1 %vm52_vm0, %v38_v25 }
  0x20   :  { %1049 = vmatmul.mubr.msk.f32.gmra.mrb[6].mxu0 %vm52_vm0, %v31_v26  ;;  %1061 = vmatmul.mubr.msk.f32.gmra.mrb[6].mxu1 %vm52_vm0, %v39_v27 }
  0xe7   :  { %v1041_v29 = vpop.f32.mrb[0].mxu0  ;;  %v1053_v31 = vpop.f32.mrb[0].mxu1 }
  0xe8   :  { %v173_v32 = vadd.f32 %v1041_v29, %v1298_v28  ;;  %v213_v33 = vadd.f32 %v1053_v31, %v1298_v28  ;;  %v167_v34 = vpop.f32.mrb[1].mxu0  ;;  %v207_v36 = vpop.f32.mrb[1].mxu1 }
  0xe9   :  { %v168_v37 = vadd.f32 %v1298_v28, %v167_v34  ;;  %v208_v38 = vadd.f32 %v1298_v28, %v207_v36  ;;  %v249_v34 = vld [vmem:[%s1860_s1 + $0x18] sm:$0xff] }
  0xea   :  { %v1310_v39 = vadd.f32 %v247_v30, %v173_v32  ;;  %v1312_v40 = vadd.f32 %v247_v30, %v213_v33 }
  0xeb   :  { %v1314_v41 = vadd.f32 %v246_v35, %v168_v37  ;;  %v1316_v42 = vadd.f32 %v246_v35, %v208_v38  ;;  %v1044_v43 = vpop.f32.mrb[2].mxu0  ;;  %v1318_v44 = vpop.f32.mrb[2].mxu1 }
  0xec   :  { %v520_v45 = vcombine.high %v1310_v39, %v1310_v39  ;;  %v566_v46 = vsel %vm551_vm1, %v1310_v39, -inf  ;;  %v528_v47 = vcombine.high %v1312_v40, %v1312_v40  ;;  %v678_v48 = vsel %vm551_vm1, %v1312_v40, -inf  ;;  %v217_v49 = vpop.f32.mrb[3].mxu1  ;;  %272 = vadd.xlane.f32.xlu1 %v1310_v39  ;;  %v177_v50 = vpop.f32.mrb[3].mxu0 }
  0xed   :  { %v567_v51 = vrot.slane %v566_v46, 4  ;;  %v679_v52 = vrot.slane %v678_v48, 4  ;;  %v519_v53 = vcombine.high %v1314_v41, %v1314_v41  ;;  %v552_v54 = vsel %vm551_vm1, %v1314_v41, -inf  ;;  %270 = vadd.xlane.f32.xlu0 %v1314_v41 }
  0xee   :  { %v573_v55 = vsel %vm551_vm1, %v520_v45, -inf  ;;  %v685_v56 = vsel %vm551_vm1, %v528_v47, -inf  ;;  %v553_v57 = vrot.slane %v552_v54, 4  ;;  %v527_v58 = vcombine.high %v1316_v42, %v1316_v42 }
  0xef   :  { %v568_v59 = vmax.f32 %v566_v46, %v567_v51  ;;  %v574_v60 = vrot.slane %v573_v55, 4  ;;  %v680_v61 = vmax.f32 %v678_v48, %v679_v52  ;;  %v686_v62 = vrot.slane %v685_v56, 4  ;;  %v1338_v63 = vpop.f32.mrb[4].mxu0  ;;  %v1340_v0 = vpop.f32.mrb[4].mxu1  ;;  %v248_v46 = vld [vmem:[%s1860_s1 + $0x10] sm:$0xff] }
  0xf0   :  { %v554_v1 = vmax.f32 %v552_v54, %v553_v57  ;;  %v559_v2 = vsel %vm551_vm1, %v519_v53, -inf  ;;  %v664_v3 = vsel %vm551_vm1, %v1316_v42, -inf  ;;  %v671_v4 = vsel %vm551_vm1, %v527_v58, -inf  ;;  %v1346_v5 = vpop.f32.mrb[5].mxu0  ;;  %v1348_v6 = vpop.f32.mrb[5].mxu1 }
  0xf1   :  { %v569_v7 = vrot.slane %v568_v59, 2  ;;  %v575_v8 = vmax.f32 %v573_v55, %v574_v60  ;;  %v681_v9 = vrot.slane %v680_v61, 2  ;;  %v687_v10 = vmax.f32 %v685_v56, %v686_v62 }
  0xf2   :  { %v555_v11 = vrot.slane %v554_v1, 2  ;;  %v560_v12 = vrot.slane %v559_v2, 4  ;;  %v665_v13 = vrot.slane %v664_v3, 4  ;;  %v672_v14 = vrot.slane %v671_v4, 4 }
  0xf3   :  { %v570_v15 = vmax.f32 %v568_v59, %v569_v7  ;;  %v576_v16 = vrot.slane %v575_v8, 2  ;;  %v682_v17 = vmax.f32 %v680_v61, %v681_v9  ;;  %v688_v18 = vrot.slane %v687_v10, 2  ;;  %v1350_v19 = vpop.f32.mrb[6].mxu0  ;;  %v1352_v20 = vpop.f32.mrb[6].mxu1 }
  0xf4   :  { %v556_v21 = vmax.f32 %v554_v1, %v555_v11  ;;  %v561_v22 = vmax.f32 %v559_v2, %v560_v12  ;;  %v666_v23 = vmax.f32 %v664_v3, %v665_v13  ;;  %v673_v24 = vmax.f32 %v671_v4, %v672_v14  ;;  %v1354_v25 = vpop.f32.mrb[7].mxu0  ;;  %v1356_v26 = vpop.f32.mrb[7].mxu1 }
  0xf5   :  { %v571_v27 = vrot.slane %v570_v15, 1  ;;  %v577_v29 = vmax.f32 %v575_v8, %v576_v16  ;;  %v683_v30 = vrot.slane %v682_v17, 1  ;;  %v183_v35 = vadd.f32 %v1044_v43, %v1298_v28 }
  0xf6   :  { %v557_v31 = vrot.slane %v556_v21, 1  ;;  %v562_v32 = vrot.slane %v561_v22, 2  ;;  %v667_v33 = vrot.slane %v666_v23, 2  ;;  %v1362_v37 = vmax.f32 %v687_v10, %v688_v18 }
  0xf7   :  { %v578_v36 = vrot.slane %v577_v29, 1  ;;  %v674_v45 = vrot.slane %v673_v24, 2  ;;  %v1367_v47 = vmax.f32 %v570_v15, %v571_v27  ;;  %v1369_v48 = vadd.f32 %v249_v34, %v183_v35  ;;  %v251_v35 = vld [vmem:[%s1860_s1 + $0x28] sm:$0xff] }
  0xf8   :  { %v563_v38 = vmax.f32 %v561_v22, %v562_v32  ;;  %v223_v51 = vadd.f32 %v1318_v44, %v1298_v28  ;;  %v218_v52 = vadd.f32 %v1298_v28, %v217_v49  ;;  %v1374_v53 = vmax.f32 %v682_v17, %v683_v30 }
  0xf9   :  { %v1376_v43 = vmax.f32 %v556_v21, %v557_v31  ;;  %v668_v54 = vmax.f32 %v666_v23, %v667_v33  ;;  %v178_v55 = vadd.f32 %v1298_v28, %v177_v50  ;;  %v522_v56 = vcombine.high %v1369_v48, %v1369_v48  ;;  %276 = vadd.xlane.f32.xlu0 %v1369_v48 }
  0xfa   :  { %v594_v57 = vsel %vm551_vm1, %v1369_v48, -inf  ;;  %v1383_v58 = vadd.f32 %v249_v34, %v223_v51  ;;  %v1385_v59 = vadd.f32 %v248_v46, %v218_v52  ;;  %v1388_v44 = vmax.f32 %v577_v29, %v578_v36 }
  0xfb   :  { %v564_v49 = vrot.slane %v563_v38, 1  ;;  %v595_v60 = vrot.slane %v594_v57, 4  ;;  %v1390_v61 = vadd.f32 %v248_v46, %v178_v55  ;;  %v601_v50 = vsel %vm551_vm1, %v522_v56, -inf }
  0xfc   :  { %v530_v62 = vcombine.high %v1383_v58, %v1383_v58  ;;  %v706_v1 = vsel %vm551_vm1, %v1383_v58, -inf  ;;  %v529_v2 = vcombine.high %v1385_v59, %v1385_v59  ;;  %v669_v3 = vrot.slane %v668_v54, 1 }
  0xfd   :  { %v596_v4 = vmax.f32 %v594_v57, %v595_v60  ;;  %v602_v7 = vrot.slane %v601_v50, 4  ;;  %v707_v8 = vrot.slane %v706_v1, 4  ;;  %274 = vadd.xlane.f32.xlu1 %v1390_v61  ;;  %v692_v10 = vsel %vm551_vm1, %v1385_v59, -inf }
  0xfe   :  { %v713_v9 = vsel %vm551_vm1, %v530_v62, -inf  ;;  %v699_v11 = vsel %vm551_vm1, %v529_v2, -inf  ;;  %v521_v12 = vcombine.high %v1390_v61, %v1390_v61  ;;  %v1406_v13 = vmax.f32 %v563_v38, %v564_v49 }
  0xff   :  { %v597_v14 = vrot.slane %v596_v4, 2  ;;  %v603_v15 = vmax.f32 %v601_v50, %v602_v7  ;;  %v708_v16 = vmax.f32 %v706_v1, %v707_v8  ;;  %v693_v17 = vrot.slane %v692_v10, 4 }
 0x100   :  { %v700_v18 = vrot.slane %v699_v11, 4  ;;  %v580_v21 = vsel %vm551_vm1, %v1390_v61, -inf  ;;  %v587_v22 = vsel %vm551_vm1, %v521_v12, -inf  ;;  %v1411_v23 = vmax.f32 %v673_v24, %v674_v45 }
 0x101   :  { %v598_v27 = vmax.f32 %v596_v4, %v597_v14  ;;  %v604_v29 = vrot.slane %v603_v15, 2  ;;  %v714_v30 = vrot.slane %v713_v9, 4  ;;  %v776_v31 = vmax.f32 %v1376_v43, %v1367_v47 }
 0x102   :  { %v694_v32 = vmax.f32 %v692_v10, %v693_v17  ;;  %v581_v33 = vrot.slane %v580_v21, 4  ;;  %v588_v34 = vrot.slane %v587_v22, 4  ;;  %v777_v36 = vmax.f32 %v1406_v13, %v1388_v44 }
 0x103   :  { %v1420_v38 = vmax.f32 %v668_v54, %v669_v3  ;;  %v709_v24 = vrot.slane %v708_v16, 2  ;;  %v193_v45 = vadd.f32 %v1338_v63, %v1298_v28  ;;  %v1424_v51 = vmax.f32 %v699_v11, %v700_v18  ;;  %v250_v63 = vld [vmem:[%s1860_s1 + $0x20] sm:$0xff] }
 0x104   :  { %v695_v46 = vrot.slane %v694_v32, 2  ;;  %v582_v52 = vmax.f32 %v580_v21, %v581_v33  ;;  %v589_v55 = vmax.f32 %v587_v22, %v588_v34  ;;  %v599_v56 = vrot.slane %v598_v27, 1 }
 0x105   :  { %v605_v57 = vmax.f32 %v603_v15, %v604_v29  ;;  %v1426_v49 = vmax.f32 %v713_v9, %v714_v30  ;;  %v1428_v60 = vadd.f32 %v251_v35, %v193_v45  ;;  %v233_v54 = vadd.f32 %v1340_v0, %v1298_v28 }
 0x106   :  { %v696_v50 = vmax.f32 %v694_v32, %v695_v46  ;;  %v583_v62 = vrot.slane %v582_v52, 2  ;;  %v590_v1 = vrot.slane %v589_v55, 2  ;;  %v1435_v2 = vmax.f32 %v708_v16, %v709_v24 }
 0x107   :  { %v524_v3 = vcombine.high %v1428_v60, %v1428_v60  ;;  %v622_v4 = vsel %vm551_vm1, %v1428_v60, -inf  ;;  %v188_v7 = vadd.f32 %v1298_v28, %v1346_v5  ;;  %v702_v8 = vrot.slane %v1424_v51, 2 }
 0x108   :  { %v584_v9 = vmax.f32 %v582_v52, %v583_v62  ;;  %v591_v10 = vmax.f32 %v589_v55, %v590_v1  ;;  %v623_v0 = vrot.slane %v622_v4, 4  ;;  %v1444_v11 = vmax.f32 %v598_v27, %v599_v56 }
 0x109   :  { %v629_v12 = vsel %vm551_vm1, %v524_v3, -inf  ;;  %v1447_v14 = vadd.f32 %v251_v35, %v233_v54  ;;  %v1449_v15 = vadd.f32 %v250_v63, %v188_v7  ;;  %v606_v16 = vrot.slane %v605_v57, 1 }
 0x10a   :  { %v697_v17 = vrot.slane %v696_v50, 1  ;;  %v585_v18 = vrot.slane %v584_v9, 1  ;;  %v624_v21 = vmax.f32 %v622_v4, %v623_v0  ;;  %v630_v22 = vrot.slane %v629_v12, 4 }
 0x10b   :  { %v532_v5 = vcombine.high %v1447_v14, %v1447_v14  ;;  %v734_v29 = vsel %vm551_vm1, %v1447_v14, -inf  ;;  %v523_v27 = vcombine.high %v1449_v15, %v1449_v15  ;;  %278 = vadd.xlane.f32.xlu1 %v1449_v15  ;;  %v592_v30 = vrot.slane %v591_v10, 1 }
 0x10c   :  { %v625_v32 = vrot.slane %v624_v21, 2  ;;  %v735_v33 = vrot.slane %v734_v29, 4  ;;  %v228_v34 = vadd.f32 %v1298_v28, %v1348_v6  ;;  %v586_v35 = vmax.f32 %v584_v9, %v585_v18 }
 0x10d   :  { %v631_v24 = vmax.f32 %v629_v12, %v630_v22  ;;  %v608_v45 = vsel %vm551_vm1, %v1449_v15, -inf  ;;  %v615_v46 = vsel %vm551_vm1, %v523_v27, -inf  ;;  %v1463_v52 = vmax.f32 %v605_v57, %v606_v16 }
 0x10e   :  { %v626_v56 = vmax.f32 %v624_v21, %v625_v32  ;;  %v741_v62 = vsel %vm551_vm1, %v532_v5, -inf  ;;  %v736_v54 = vmax.f32 %v734_v29, %v735_v33  ;;  %v609_v3 = vrot.slane %v608_v45, 4  ;;  %v253_v21 = vld [vmem:[%s1860_s1 + $0x38] sm:$0xff] }
 0x10f   :  { %v632_v1 = vrot.slane %v631_v24, 2  ;;  %v616_v4 = vrot.slane %v615_v46, 4  ;;  %v1467_v7 = vmax.f32 %v696_v50, %v697_v17  ;;  %v593_v6 = vmax.f32 %v591_v10, %v592_v30 }
 0x110   :  { %v1469_v9 = vadd.f32 %v250_v63, %v228_v34  ;;  %v203_v0 = vadd.f32 %v1350_v19, %v1298_v28  ;;  %v1476_v57 = vmax.f32 %v776_v31, %v586_v35  ;;  %v610_v16 = vmax.f32 %v608_v45, %v609_v3 }
 0x111   :  { %v633_v12 = vmax.f32 %v631_v24, %v632_v1  ;;  %v617_v18 = vmax.f32 %v615_v46, %v616_v4  ;;  %v627_v50 = vrot.slane %v626_v56, 1  ;;  %v742_v17 = vrot.slane %v741_v62, 4 }
 0x112   :  { %v531_v63 = vcombine.high %v1469_v9, %v1469_v9  ;;  %v720_v19 = vsel %vm551_vm1, %v1469_v9, -inf  ;;  %v737_v10 = vrot.slane %v736_v54, 2  ;;  %v611_v22 = vrot.slane %v610_v16, 2 }
 0x113   :  { %v618_v47 = vrot.slane %v617_v18, 2  ;;  %v721_v43 = vrot.slane %v720_v19, 4  ;;  %v634_v31 = vrot.slane %v633_v12, 1  ;;  %v1486_v29 = vadd.f32 %v253_v21, %v203_v0 }
 0x114   :  { %v727_v5 = vsel %vm551_vm1, %v531_v63, -inf  ;;  %v243_v27 = vadd.f32 %v1352_v20, %v1298_v28  ;;  %v612_v30 = vmax.f32 %v610_v16, %v611_v22  ;;  %v198_v34 = vadd.f32 %v1298_v28, %v1354_v25  ;;  %v252_v25 = vld [vmem:[%s1860_s1 + $0x30] sm:$0xff] }
 0x115   :  { %v619_v32 = vmax.f32 %v617_v18, %v618_v47  ;;  %v722_v33 = vmax.f32 %v720_v19, %v721_v43  ;;  %v728_v35 = vrot.slane %v727_v5, 4  ;;  %v526_v24 = vcombine.high %v1486_v29, %v1486_v29 }
 0x116   :  { %v650_v45 = vsel %vm551_vm1, %v1486_v29, -inf  ;;  %v1496_v46 = vadd.f32 %v253_v21, %v243_v27  ;;  %v1501_v1 = vmax.f32 %v777_v36, %v593_v6  ;;  %v613_v20 = vrot.slane %v612_v30, 1 }
 0x117   :  { %v620_v3 = vrot.slane %v619_v32, 1  ;;  %v651_v4 = vrot.slane %v650_v45, 4  ;;  %v1506_v0 = vmax.f32 %v626_v56, %v627_v50  ;;  %v1508_v16 = vmax.f32 %v736_v54, %v737_v10 }
 0x118   :  { %v1510_v18 = vmax.f32 %v741_v62, %v742_v17  ;;  %v657_v21 = vsel %vm551_vm1, %v526_v24, -inf  ;;  %v1513_v63 = vmax.f32 %v633_v12, %v634_v31  ;;  %v723_v44 = vrot.slane %v722_v33, 2 }
 0x119   :  { %v652_v13 = vmax.f32 %v650_v45, %v651_v4  ;;  %v762_v36 = vsel %vm551_vm1, %v1496_v46, -inf  ;;  %v729_v6 = vmax.f32 %v727_v5, %v728_v35  ;;  %v658_v19 = vrot.slane %v657_v21, 4 }
 0x11a   :  { %v1517_v22 = vadd.f32 %v252_v25, %v198_v34  ;;  %v238_v56 = vadd.f32 %v1298_v28, %v1356_v26  ;;  %v1521_v54 = vmax.f32 %v612_v30, %v613_v20  ;;  %v1523_v62 = vmax.f32 %v619_v32, %v620_v3 }
 0x11b   :  { %v653_v50 = vrot.slane %v652_v13, 2  ;;  %v534_v12 = vcombine.high %v1496_v46, %v1496_v46  ;;  %v659_v17 = vmax.f32 %v657_v21, %v658_v19  ;;  %v763_v10 = vrot.slane %v762_v36, 4 }
 0x11c   :  { %v525_v47 = vcombine.high %v1517_v22, %v1517_v22  ;;  %v636_v43 = vsel %vm551_vm1, %v1517_v22, -inf  ;;  %282 = vadd.xlane.f32.xlu1 %v1517_v22  ;;  %v1532_v26 = vadd.f32 %v252_v25, %v238_v56  ;;  %v676_v5 = vrot.slane %v1411_v23, 1 }
 0x11d   :  { %v654_v31 = vmax.f32 %v652_v13, %v653_v50  ;;  %v637_v28 = vrot.slane %v636_v43, 4  ;;  %v660_v27 = vrot.slane %v659_v17, 2  ;;  %v690_v32 = vrot.slane %v1362_v37, 1 }
 0x11e   :  { %v643_v30 = vsel %vm551_vm1, %v525_v47, -inf  ;;  %v703_v34 = vmax.f32 %v1424_v51, %v702_v8  ;;  %v724_v35 = vmax.f32 %v722_v33, %v723_v44  ;;  %v533_v20 = vcombine.high %v1532_v26, %v1532_v26 }
 0x11f   :  { %v638_v24 = vmax.f32 %v636_v43, %v637_v28  ;;  %v644_v45 = vrot.slane %v643_v30, 4  ;;  %v778_v3 = vmax.f32 %v1521_v54, %v1506_v0  ;;  %v655_v4 = vrot.slane %v654_v31, 1 }
 0x120   :  { %v661_v25 = vmax.f32 %v659_v17, %v660_v27  ;;  %v748_v21 = vsel %vm551_vm1, %v1532_v26, -inf  ;;  %286 = vadd.xlane.f32.xlu1 %v1316_v42  ;;  %v764_v13 = vmax.f32 %v762_v36, %v763_v10  ;;  %v755_v8 = vsel %vm551_vm1, %v533_v20, -inf }
 0x121   :  { %v639_v19 = vrot.slane %v638_v24, 2  ;;  %v645_v56 = vmax.f32 %v643_v30, %v644_v45  ;;  %v749_v51 = vrot.slane %v748_v21, 4  ;;  %v677_v33 = vmax.f32 %v1411_v23, %v676_v5 }
 0x122   :  { %v691_v44 = vmax.f32 %v1362_v37, %v690_v32  ;;  %v704_v50 = vrot.slane %v703_v34, 1  ;;  %v662_v47 = vrot.slane %v661_v25, 1  ;;  %v656_v43 = vmax.f32 %v654_v31, %v655_v4 }
 0x123   :  { %v640_v0 = vmax.f32 %v638_v24, %v639_v19  ;;  %v646_v54 = vrot.slane %v645_v56, 2  ;;  %v750_v17 = vmax.f32 %v748_v21, %v749_v51  ;;  %v756_v28 = vrot.slane %v755_v8, 4 }
 0x124   :  { %290 = vadd.xlane.f32.xlu1 %v1385_v59  ;;  %v716_v36 = vrot.slane %v1426_v49, 2  ;;  %v730_v10 = vrot.slane %v729_v6, 2  ;;  %v725_v20 = vrot.slane %v724_v35, 1  ;;  %v705_v55 = vmax.f32 %v703_v34, %v704_v50 }
 0x125   :  { %v641_v27 = vrot.slane %v640_v0, 1  ;;  %v647_v30 = vmax.f32 %v645_v56, %v646_v54  ;;  %v751_v45 = vrot.slane %v750_v17, 2  ;;  %v739_v37 = vrot.slane %v1508_v16, 1 }
 0x126   :  { %v731_v23 = vmax.f32 %v729_v6, %v730_v10  ;;  %v744_v5 = vrot.slane %v1510_v18, 2  ;;  %v663_v21 = vmax.f32 %v661_v25, %v662_v47  ;;  %v717_v4 = vmax.f32 %v1426_v49, %v716_v36 }
 0x127   :  { %v642_v32 = vmax.f32 %v640_v0, %v641_v27  ;;  %v648_v24 = vrot.slane %v647_v30, 1  ;;  %v752_v31 = vmax.f32 %v750_v17, %v751_v45  ;;  %v757_v51 = vmax.f32 %v755_v8, %v756_v28 }
 0x128   :  { %294 = vadd.xlane.f32.xlu1 %v1469_v9  ;;  %v732_v19 = vrot.slane %v731_v23, 1  ;;  %v745_v56 = vmax.f32 %v1510_v18, %v744_v5  ;;  %v726_v6 = vmax.f32 %v724_v35, %v725_v20  ;;  %v765_v54 = vrot.slane %v764_v13, 2 }
 0x129   :  { %v649_v34 = vmax.f32 %v647_v30, %v648_v24  ;;  %v753_v50 = vrot.slane %v752_v31, 1  ;;  %v740_v0 = vmax.f32 %v1508_v16, %v739_v37  ;;  %v758_v25 = vrot.slane %v757_v51, 2 }
 0x12a   :  { %v746_v10 = vrot.slane %v745_v56, 1  ;;  %v769_v47 = vsel %vm551_vm1, %v534_v12, -inf  ;;  %v786_v49 = vmax.f32 %v778_v3, %v642_v32  ;;  %v766_v17 = vmax.f32 %v764_v13, %v765_v54 }
 0x12b   :  { %v770_v18 = vrot.slane %v769_v47, 4  ;;  %v779_v8 = vmax.f32 %v1523_v62, %v1513_v63  ;;  %v733_v35 = vmax.f32 %v731_v23, %v732_v19  ;;  %v754_v36 = vmax.f32 %v752_v31, %v753_v50 }
 0x12c   :  { %298 = vadd.xlane.f32.xlu1 %v1532_v26  ;;  %v747_v28 = vmax.f32 %v745_v56, %v746_v10  ;;  %v759_v16 = vmax.f32 %v757_v51, %v758_v25  ;;  %v780_v30 = vmax.f32 %v1420_v38, %v1374_v53  ;;  %v781_v45 = vmax.f32 %v677_v33, %v691_v44 }
 0x12d   :  { %v771_v27 = vmax.f32 %v769_v47, %v770_v18  ;;  %v787_v20 = vmax.f32 %v779_v8, %v649_v34  ;;  %v718_v12 = vrot.slane %v717_v4, 1  ;;  %v767_v3 = vrot.slane %v766_v17, 1 }
 0x12e   :  { %v760_v37 = vrot.slane %v759_v16, 1  ;;  %v782_v13 = vmax.f32 %v726_v6, %v740_v0  ;;  %v788_v32 = vmax.f32 %v780_v30, %v1467_v7  ;;  %v789_v63 = vmax.f32 %v781_v45, %v705_v55 }
 0x12f   :  { %v772_v5 = vrot.slane %v771_v27, 2  ;;  %v1570_v62 = vmax.f32 %v1476_v57, %v1444_v11  ;;  %v1574_v24 = vmax.f32 %v1501_v1, %v1463_v52  ;;  %v1576_v53 = vmax.f32 %v786_v49, %v656_v43 }
 0x130   :  { %v761_v23 = vmax.f32 %v759_v16, %v760_v37  ;;  %v1578_v38 = vmax.f32 %v787_v20, %v663_v21  ;;  %v1865_v33 = vrot.slane %v1435_v2, 1  ;;  %v783_v7 = vmax.f32 %v733_v35, %v747_v28 }
 0x131   :  { %v773_v31 = vmax.f32 %v771_v27, %v772_v5  ;;  %v790_v55 = vmax.f32 %v782_v13, %v754_v36  ;;  %v719_v19 = vmax.f32 %v717_v4, %v718_v12  ;;  %v768_v56 = vmax.f32 %v766_v17, %v767_v3 }
 0x132   :  { %v712_v44 = vmax.f32 %v1435_v2, %v1865_v33  ;;  %v809_v11 = vsel %vm808_vm2, %v1574_v24, %v1570_v62  ;;  %v791_v57 = vmax.f32 %v783_v7, %v761_v23 }
 0x133   :  { %v774_v52 = vrot.slane %v773_v31, 1  ;;  %v811_v43 = vsel %vm810_vm3, %v1576_v53, %v809_v11  ;;  %v1590_v21 = vmax.f32 %v789_v63, %v719_v19  ;;  %v1594_v51 = vmax.f32 %v790_v55, %v768_v56 }
 0x134   :  { %v1586_v1 = vmax.f32 %v788_v32, %v712_v44  ;;  %v813_v2 = vsel %vm812_vm4, %v1578_v38, %v811_v43 }
 0x135   :  { %v775_v4 = vmax.f32 %v773_v31, %v774_v52 }
 0x136   :  { %v815_v34 = vsel %vm814_vm5, %v1586_v1, %v813_v2 }
 0x137   :  { %v817_v6 = vsel %vm816_vm6, %v1590_v21, %v815_v34  ;;  %v1600_v50 = vmax.f32 %v791_v57, %v775_v4 }
 0x138   :  { %v819_v54 = vsel %vm818_vm7, %v1594_v51, %v817_v6 }
 0x139   :  { %v821_v0 = vsel %vm820_vm8, %v1600_v50, %v819_v54 }
 0x13a   :  { %823 = vadd.xlane.f32.xlu0 %v821_v0 }
 0x13e   :  { %280 = vadd.xlane.f32.xlu0 %v1428_v60 }
 0x142   :  { %284 = vadd.xlane.f32.xlu0 %v1486_v29 }
 0x146   :  { %288 = vadd.xlane.f32.xlu0 %v1312_v40 }
 0x14a   :  { %292 = vadd.xlane.f32.xlu0 %v1383_v58 }
 0x14e   :  { %296 = vadd.xlane.f32.xlu0 %v1447_v14 }
 0x152   :  { %300 = vadd.xlane.f32.xlu0 %v1496_v46 }
 0x179   :  { %v273_v10 = vpop.xlane.xlu1 %272 }
 0x17a   :  { %v304_v25 = vmul.f32 0.0078125, %v273_v10  ;;  %v271_v47 = vpop.xlane.xlu0 %270 }
 0x17b   :  { %v303_v49 = vmul.f32 0.0078125, %v271_v47 }
 0x17c   :  { %v1613_v17 = vsub.f32 %v1310_v39, %v304_v25 }
 0x17d   :  { %v1616_v18 = vsub.f32 %v1314_v41, %v303_v49 }
 0x17e   :  { %v336_v8 = vmul.f32 %v1613_v17, %v1613_v17 }
 0x17f   :  { %v335_v35 = vmul.f32 %v1616_v18, %v1616_v18 }
 0x180   :  { %353 = vadd.xlane.f32.xlu1 %v336_v8 }
 0x181   :  { %351 = vadd.xlane.f32.xlu0 %v335_v35 }
 0x186   :  { %v277_v55 = vpop.xlane.xlu0 %276 }
 0x187   :  { %v306_v49 = vmul.f32 0.0078125, %v277_v55 }
 0x18a   :  { %v275_v28 = vpop.xlane.xlu1 %274 }
 0x18b   :  { %v305_v30 = vmul.f32 0.0078125, %v275_v28 }
 0x18d   :  { %v1626_v41 = vsub.f32 %v1390_v61, %v305_v30 }
 0x18f   :  { %v337_v5 = vmul.f32 %v1626_v41, %v1626_v41 }
 0x198   :  { %v279_v36 = vpop.xlane.xlu1 %278 }
 0x199   :  { %v307_v3 = vmul.f32 0.0078125, %v279_v36 }
 0x1a9   :  { %v283_v16 = vpop.xlane.xlu1 %282 }
 0x1aa   :  { %v309_v63 = vmul.f32 0.0078125, %v283_v16 }
 0x1ac   :  { %v1641_v23 = vsub.f32 %v1517_v22, %v309_v63 }
 0x1ad   :  { %v287_v27 = vpop.xlane.xlu1 %286 }
 0x1ae   :  { %v311_v45 = vmul.f32 0.0078125, %v287_v27  ;;  %v1685_v27 = vsub.f32 %v1369_v48, %v306_v49 }
 0x1b0   :  { %v1623_v39 = vsub.f32 %v1316_v42, %v311_v45  ;;  %v1636_v42 = vsub.f32 %v1449_v15, %v307_v3  ;;  %v341_v15 = vmul.f32 %v1641_v23, %v1641_v23 }
 0x1b1   :  { %v291_v20 = vpop.xlane.xlu1 %290 }
 0x1b2   :  { %v313_v12 = vmul.f32 0.0078125, %v291_v20  ;;  %v343_v37 = vmul.f32 %v1623_v39, %v1623_v39 }
 0x1b4   :  { %367 = vadd.xlane.f32.xlu0 %v343_v37  ;;  %v1631_v13 = vsub.f32 %v1385_v59, %v313_v12  ;;  %v339_v59 = vmul.f32 %v1636_v42, %v1636_v42 }
 0x1b5   :  { %v295_v32 = vpop.xlane.xlu1 %294 }
 0x1b6   :  { %v345_v61 = vmul.f32 %v1631_v13, %v1631_v13  ;;  %v315_v33 = vmul.f32 0.0078125, %v295_v32  ;;  %v338_v32 = vmul.f32 %v1685_v27, %v1685_v27 }
 0x1b8   :  { %355 = vadd.xlane.f32.xlu0 %v337_v5  ;;  %v1646_v31 = vsub.f32 %v1469_v9, %v315_v33 }
 0x1b9   :  { %v299_v44 = vpop.xlane.xlu1 %298 }
 0x1ba   :  { %v317_v7 = vmul.f32 0.0078125, %v299_v44  ;;  %v347_v22 = vmul.f32 %v1646_v31, %v1646_v31 }
 0x1bc   :  { %371 = vadd.xlane.f32.xlu0 %v345_v61  ;;  %v1651_v19 = vsub.f32 %v1532_v26, %v317_v7 }
 0x1be   :  { %v349_v52 = vmul.f32 %v1651_v19, %v1651_v19 }
 0x1c0   :  { %359 = vadd.xlane.f32.xlu0 %v339_v59 }
 0x1c4   :  { %363 = vadd.xlane.f32.xlu0 %v341_v15 }
 0x1c7   :  { %v824_v56 = vpop.xlane.xlu0 %823 }
 0x1c8   :  { %v825_v11 = vmul.f32 0.0078125, %v824_v56  ;;  %375 = vadd.xlane.f32.xlu0 %v347_v22 }
 0x1ca   :  { %v827_v9 = vrot.slane %v825_v11, 1  ;;  %v828_v57 = vrot.slane %v825_v11, 2  ;;  %v829_v34 = vrot.slane %v825_v11, 3  ;;  %v1666_v54 = vsub.f32 %v1570_v62, %v825_v11 }
 0x1cb   :  { %v281_v43 = vpop.xlane.xlu0 %280  ;;  %v830_v0 = vrot.slane %v825_v11, 4  ;;  %v831_v8 = vrot.slane %v825_v11, 5  ;;  %v832_v20 = vrot.slane %v825_v11, 6  ;;  %v833_v37 = vrot.slane %v825_v11, 7 }
 0x1cc   :  { %379 = vadd.xlane.f32.xlu0 %v349_v52  ;;  %v1658_v2 = vsub.f32 %v1574_v24, %v827_v9  ;;  %v1661_v4 = vsub.f32 %v1576_v53, %v828_v57  ;;  %v1671_v47 = vsub.f32 %v1578_v38, %v829_v34  ;;  %v850_v35 = vmul.f32 %v1666_v54, %v1666_v54 }
 0x1cd   :  { %v1679_v62 = vsub.f32 %v1586_v1, %v830_v0  ;;  %v308_v30 = vmul.f32 0.0078125, %v281_v43  ;;  %v1701_v63 = vsub.f32 %v1594_v51, %v832_v20  ;;  %v1707_v44 = vsub.f32 %v1600_v50, %v833_v37  ;;  %v1748_v20 = vld [vmem:[%s1862_s3 + $0x2] ss:$0 sm:$0xff] }
 0x1ce   :  { %v851_v6 = vmul.f32 %v1658_v2, %v1658_v2  ;;  %v852_v10 = vmul.f32 %v1661_v4, %v1661_v4  ;;  %v853_v16 = vmul.f32 %v1671_v47, %v1671_v47 }
 0x1cf   :  { %v285_v26 = vpop.xlane.xlu0 %284  ;;  %v854_v1 = vmul.f32 %v1679_v62, %v1679_v62  ;;  %v1696_v5 = vsub.f32 %v1428_v60, %v308_v30  ;;  %v856_v51 = vmul.f32 %v1701_v63, %v1701_v63  ;;  %v857_v56 = vmul.f32 %v1707_v44, %v1707_v44 }
 0x1d0   :  { %v866_v24 = vrot.slane %v851_v6, 7  ;;  %v868_v36 = vrot.slane %v852_v10, 6  ;;  %v870_v3 = vrot.slane %v853_v16, 5  ;;  %v310_v48 = vmul.f32 0.0078125, %v285_v26 }
 0x1d1   :  { %v872_v59 = vrot.slane %v854_v1, 4  ;;  %v340_v7 = vmul.f32 %v1696_v5, %v1696_v5  ;;  %v876_v52 = vrot.slane %v856_v51, 2  ;;  %v878_v57 = vrot.slane %v857_v56, 1 }
 0x1d2   :  { %v867_v38 = vsel %vm808_vm2, %v866_v24, %v850_v35  ;;  %v1710_v60 = vsub.f32 %v1486_v29, %v310_v48 }
 0x1d3   :  { %v289_v25 = vpop.xlane.xlu0 %288  ;;  %v869_v12 = vsel %vm810_vm3, %v868_v36, %v867_v38 }
 0x1d4   :  { %v312_v53 = vmul.f32 0.0078125, %v289_v25  ;;  %v871_v33 = vsel %vm812_vm4, %v870_v3, %v869_v12  ;;  %v342_v29 = vmul.f32 %v1710_v60, %v1710_v60 }
 0x1d5   :  { %v873_v15 = vsel %vm814_vm5, %v872_v59, %v871_v33 }
 0x1d6   :  { %v1676_v28 = vsub.f32 %v1312_v40, %v312_v53  ;;  %v1690_v40 = vsub.f32 %v1590_v21, %v831_v8 }
 0x1d7   :  { %v293_v21 = vpop.xlane.xlu0 %292 }
 0x1d8   :  { %v344_v45 = vmul.f32 %v1676_v28, %v1676_v28  ;;  %v855_v61 = vmul.f32 %v1690_v40, %v1690_v40  ;;  %v314_v11 = vmul.f32 0.0078125, %v293_v21 }
 0x1da   :  { %369 = vadd.xlane.f32.xlu1 %v344_v45  ;;  %v874_v55 = vrot.slane %v855_v61, 3  ;;  %v1724_v43 = vsub.f32 %v1383_v58, %v314_v11 }
 0x1db   :  { %v297_v22 = vpop.xlane.xlu0 %296 }
 0x1dc   :  { %v875_v50 = vsel %vm816_vm6, %v874_v55, %v873_v15  ;;  %v316_v26 = vmul.f32 0.0078125, %v297_v22  ;;  %v346_v25 = vmul.f32 %v1724_v43, %v1724_v43 }
 0x1dd   :  { %v877_v9 = vsel %vm818_vm7, %v876_v52, %v875_v50 }
 0x1de   :  { %357 = vadd.xlane.f32.xlu1 %v338_v32  ;;  %v879_v6 = vsel %vm820_vm8, %v878_v57, %v877_v9  ;;  %v1728_v0 = vsub.f32 %v1447_v14, %v316_v26 }
 0x1df   :  { %v301_v34 = vpop.xlane.xlu0 %300 }
 0x1e0   :  { %v318_v10 = vmul.f32 0.0078125, %v301_v34  ;;  %v348_v58 = vmul.f32 %v1728_v0, %v1728_v0 }
 0x1e2   :  { %361 = vadd.xlane.f32.xlu1 %v340_v7  ;;  %v1733_v24 = vsub.f32 %v1496_v46, %v318_v10  ;;  %v1742_v46 = vld [vmem:[%s1862_s3 + $0x1] ss:$0 sm:$0xff]  ;;  %s1173_s3 = smov [#allocation2]  }
 0x1e3   :  { %s955_s9 = sshll.u32 %s1173_s3, 4  ;;  %s956_s9 = int_to_ptr.vmem [resolvable:$true] %s955_s9 }
 0x1e4   :  { %v350_v49 = vmul.f32 %v1733_v24, %v1733_v24  ;;  %s1125_s12 = scalar_lea.vmem %s956_s9, 2048  ;;  %p1130_p1 = scmp.lt.s32.totalorder %s956_s9, %s956_s9 }
 0x1e5   :  { %p1126_p0 = scmp.ne.s32.totalorder %s956_s9, %s1125_s12  ;;  %p1131_p2 = scmp.lt.s32.totalorder %s1125_s12, %s1125_s12 }
 0x1e6   :  { %365 = vadd.xlane.f32.xlu1 %v342_v29 }
 0x1e7   :  { %p1132_p3 = por %p1131_p2, %p1130_p1 }
 0x1e9   :  { %p1133_p4 = pnand %p1132_p3, %p1126_p0 }
 0x1ea   :  { %881 = vadd.xlane.f32.xlu1 %v879_v6 }
 0x1ee   :  { %373 = vadd.xlane.f32.xlu1 %v346_v25 }
 0x1f2   :  { %377 = vadd.xlane.f32.xlu1 %v348_v58 }
 0x1f6   :  { %381 = vadd.xlane.f32.xlu1 %v350_v49 }
 0x20d   :  { %v354_v53 = vpop.xlane.xlu1 %353 }
 0x20e   :  { %v384_v8 = vmul.f32 0.0078125, %v354_v53  ;;  %v352_v14 = vpop.xlane.xlu0 %351 }
 0x20f   :  { %v383_v35 = vmul.f32 0.0078125, %v352_v14 }
 0x210   :  { %v400_v36 = vadd.f32 1e-05, %v384_v8 }
 0x211   :  { %v399_v16 = vadd.f32 1e-05, %v383_v35 }
 0x212   :  { %1091 = vrsqrt.f32 %v400_v36 }
 0x213   :  { %1093 = vrsqrt.f32 %v399_v16 }
 0x21c   :  { %v1092_v38 = vpop.eup %1091 }
 0x21d   :  { %v1094_v30 = vpop.eup %1093  ;;  %v432_v45 = vmul.f32 %v1092_v38, %v1613_v17 }
 0x21e   :  { %v431_v1 = vmul.f32 %v1094_v30, %v1616_v18 }
 0x21f   :  { %v452_v12 = vmul.f32 %v1742_v46, %v432_v45 }
 0x220   :  { %v451_v37 = vmul.f32 %v1742_v46, %v431_v1 }
 0x221   :  { %v472_v3 = vadd.f32 %v1748_v20, %v452_v12 }
 0x222   :  { %v471_v48 = vadd.f32 %v1748_v20, %v451_v37 }
 0x223   :  { %488 = vst [vmem:[#allocation2 + $0x8] sm:$0xff] %v472_v3 }
 0x224   :  { %487 = vst [vmem:[#allocation2] sm:$0xff] %v471_v48 }
 0x241   :  { %v368_v32 = vpop.xlane.xlu0 %367 }
 0x242   :  { %v391_v21 = vmul.f32 0.0078125, %v368_v32 }
 0x244   :  { %v407_v17 = vadd.f32 1e-05, %v391_v21 }
 0x245   :  { %v356_v61 = vpop.xlane.xlu0 %355 }
 0x246   :  { %1095 = vrsqrt.f32 %v407_v17  ;;  %v385_v33 = vmul.f32 0.0078125, %v356_v61 }
 0x248   :  { %v401_v59 = vadd.f32 1e-05, %v385_v33 }
 0x249   :  { %v372_v7 = vpop.xlane.xlu0 %371 }
 0x24a   :  { %1097 = vrsqrt.f32 %v401_v59  ;;  %v393_v18 = vmul.f32 0.0078125, %v372_v7 }
 0x24c   :  { %v409_v51 = vadd.f32 1e-05, %v393_v18 }
 0x24d   :  { %v360_v15 = vpop.xlane.xlu0 %359 }
 0x24e   :  { %1099 = vrsqrt.f32 %v409_v51  ;;  %v387_v55 = vmul.f32 0.0078125, %v360_v15 }
 0x250   :  { %v1096_v22 = vpop.eup %1095  ;;  %v403_v56 = vadd.f32 1e-05, %v387_v55 }
 0x251   :  { %v439_v50 = vmul.f32 %v1096_v22, %v1623_v39  ;;  %v364_v11 = vpop.xlane.xlu0 %363 }
 0x252   :  { %1101 = vrsqrt.f32 %v403_v56  ;;  %v389_v29 = vmul.f32 0.0078125, %v364_v11 }
 0x253   :  { %v459_v52 = vmul.f32 %v1742_v46, %v439_v50 }
 0x254   :  { %v1098_v9 = vpop.eup %1097  ;;  %v405_v57 = vadd.f32 1e-05, %v389_v29 }
 0x255   :  { %v479_v26 = vadd.f32 %v1748_v20, %v459_v52  ;;  %v433_v34 = vmul.f32 %v1098_v9, %v1626_v41  ;;  %v376_v6 = vpop.xlane.xlu0 %375 }
 0x256   :  { %1103 = vrsqrt.f32 %v405_v57  ;;  %v395_v10 = vmul.f32 0.0078125, %v376_v6 }
 0x257   :  { %495 = vst [vmem:[#allocation2 + $0x40] sm:$0xff] %v479_v26  ;;  %v453_v25 = vmul.f32 %v1742_v46, %v433_v34 }
 0x258   :  { %v1100_v58 = vpop.eup %1099  ;;  %v411_v49 = vadd.f32 1e-05, %v395_v10 }
 0x259   :  { %v473_v39 = vadd.f32 %v1748_v20, %v453_v25  ;;  %v441_v53 = vmul.f32 %v1100_v58, %v1631_v13  ;;  %v380_v8 = vpop.xlane.xlu0 %379 }
 0x25a   :  { %1105 = vrsqrt.f32 %v411_v49  ;;  %v397_v14 = vmul.f32 0.0078125, %v380_v8 }
 0x25b   :  { %489 = vst [vmem:[#allocation2 + $0x10] sm:$0xff] %v473_v39  ;;  %v461_v35 = vmul.f32 %v1742_v46, %v441_v53 }
 0x25c   :  { %v1102_v36 = vpop.eup %1101  ;;  %v413_v41 = vadd.f32 1e-05, %v397_v14 }
 0x25d   :  { %v481_v16 = vadd.f32 %v1748_v20, %v461_v35  ;;  %v435_v38 = vmul.f32 %v1102_v36, %v1636_v42 }
 0x25e   :  { %1107 = vrsqrt.f32 %v413_v41 }
 0x25f   :  { %497 = vst [vmem:[#allocation2 + $0x50] sm:$0xff] %v481_v16  ;;  %v455_v30 = vmul.f32 %v1742_v46, %v435_v38 }
 0x260   :  { %v1104_v45 = vpop.eup %1103 }
 0x261   :  { %v475_v1 = vadd.f32 %v1748_v20, %v455_v30  ;;  %v437_v13 = vmul.f32 %v1104_v45, %v1641_v23 }
 0x263   :  { %491 = vst [vmem:[#allocation2 + $0x20] sm:$0xff] %v475_v1  ;;  %v457_v12 = vmul.f32 %v1742_v46, %v437_v13 }
 0x264   :  { %v1106_v37 = vpop.eup %1105 }
 0x265   :  { %v477_v3 = vadd.f32 %v1748_v20, %v457_v12  ;;  %v443_v48 = vmul.f32 %v1106_v37, %v1646_v31 }
 0x267   :  { %493 = vst [vmem:[#allocation2 + $0x30] sm:$0xff] %v477_v3  ;;  %v463_v42 = vmul.f32 %v1742_v46, %v443_v48  ;;  %v370_v32 = vpop.xlane.xlu1 %369 }
 0x268   :  { %v1108_v21 = vpop.eup %1107  ;;  %v392_v17 = vmul.f32 0.0078125, %v370_v32 }
 0x269   :  { %v483_v61 = vadd.f32 %v1748_v20, %v463_v42  ;;  %v445_v33 = vmul.f32 %v1108_v21, %v1651_v19 }
 0x26a   :  { %v408_v59 = vadd.f32 1e-05, %v392_v17 }
 0x26b   :  { %499 = vst [vmem:[#allocation2 + $0x60] sm:$0xff] %v483_v61  ;;  %v465_v23 = vmul.f32 %v1742_v46, %v445_v33  ;;  %v358_v7 = vpop.xlane.xlu1 %357 }
 0x26c   :  { %1109 = vrsqrt.f32 %v408_v59  ;;  %v386_v18 = vmul.f32 0.0078125, %v358_v7 }
 0x26d   :  { %v485_v51 = vadd.f32 %v1748_v20, %v465_v23 }
 0x26e   :  { %v402_v31 = vadd.f32 1e-05, %v386_v18 }
 0x26f   :  { %501 = vst [vmem:[#allocation2 + $0x70] sm:$0xff] %v485_v51  ;;  %v362_v15 = vpop.xlane.xlu1 %361 }
 0x270   :  { %1111 = vrsqrt.f32 %v402_v31  ;;  %v388_v55 = vmul.f32 0.0078125, %v362_v15 }
 0x272   :  { %v404_v22 = vadd.f32 1e-05, %v388_v55 }
 0x273   :  { %v366_v56 = vpop.xlane.xlu1 %365 }
 0x274   :  { %1113 = vrsqrt.f32 %v404_v22  ;;  %v390_v50 = vmul.f32 0.0078125, %v366_v56 }
 0x276   :  { %v1110_v11 = vpop.eup %1109  ;;  %v406_v19 = vadd.f32 1e-05, %v390_v50 }
 0x277   :  { %v440_v29 = vmul.f32 %v1110_v11, %v1676_v28  ;;  %v882_v52 = vpop.xlane.xlu1 %881 }
 0x278   :  { %1115 = vrsqrt.f32 %v406_v19  ;;  %v883_v9 = vmul.f32 0.0078125, %v882_v52 }
 0x279   :  { %v460_v57 = vmul.f32 %v1742_v46, %v440_v29 }
 0x27a   :  { %v1112_v26 = vpop.eup %1111  ;;  %v884_v34 = vadd.f32 1e-05, %v883_v9 }
 0x27b   :  { %v480_v6 = vadd.f32 %v1748_v20, %v460_v57  ;;  %v434_v10 = vmul.f32 %v1112_v26, %v1685_v27  ;;  %v374_v25 = vpop.xlane.xlu1 %373 }
 0x27c   :  { %1117 = vrsqrt.f32 %v884_v34  ;;  %v394_v58 = vmul.f32 0.0078125, %v374_v25 }
 0x27d   :  { %496 = vst [vmem:[#allocation2 + $0x48] sm:$0xff] %v480_v6  ;;  %v454_v49 = vmul.f32 %v1742_v46, %v434_v10 }
 0x27e   :  { %v1114_v39 = vpop.eup %1113  ;;  %v410_v53 = vadd.f32 1e-05, %v394_v58 }
 0x27f   :  { %v474_v28 = vadd.f32 %v1748_v20, %v454_v49  ;;  %v436_v8 = vmul.f32 %v1114_v39, %v1696_v5  ;;  %v378_v14 = vpop.xlane.xlu1 %377 }
 0x280   :  { %1119 = vrsqrt.f32 %v410_v53  ;;  %v396_v35 = vmul.f32 0.0078125, %v378_v14 }
 0x281   :  { %490 = vst [vmem:[#allocation2 + $0x18] sm:$0xff] %v474_v28  ;;  %v456_v36 = vmul.f32 %v1742_v46, %v436_v8 }
 0x282   :  { %v1116_v41 = vpop.eup %1115  ;;  %v412_v27 = vadd.f32 1e-05, %v396_v35 }
 0x283   :  { %v476_v16 = vadd.f32 %v1748_v20, %v456_v36  ;;  %v438_v38 = vmul.f32 %v1116_v41, %v1710_v60  ;;  %v382_v30 = vpop.xlane.xlu1 %381 }
 0x284   :  { %1121 = vrsqrt.f32 %v412_v27  ;;  %v398_v45 = vmul.f32 0.0078125, %v382_v30 }
 0x285   :  { %492 = vst [vmem:[#allocation2 + $0x28] sm:$0xff] %v476_v16  ;;  %v458_v1 = vmul.f32 %v1742_v46, %v438_v38 }
 0x286   :  { %v1118_v13 = vpop.eup %1117  ;;  %v414_v5 = vadd.f32 1e-05, %v398_v45 }
 0x287   :  { %v478_v12 = vadd.f32 %v1748_v20, %v458_v1  ;;  %v887_v37 = vrot.slane %v1118_v13, 1  ;;  %v888_v3 = vrot.slane %v1118_v13, 2  ;;  %v889_v48 = vrot.slane %v1118_v13, 3 }
 0x288   :  { %1123 = vrsqrt.f32 %v414_v5  ;;  %v890_v42 = vrot.slane %v1118_v13, 4  ;;  %v891_v32 = vrot.slane %v1118_v13, 5  ;;  %v892_v21 = vrot.slane %v1118_v13, 6 }
 0x289   :  { %494 = vst [vmem:[#allocation2 + $0x38] sm:$0xff] %v478_v12  ;;  %v893_v17 = vrot.slane %v1118_v13, 7  ;;  %v902_v60 = vmul.f32 %v1118_v13, %v1666_v54  ;;  %v903_v61 = vmul.f32 %v887_v37, %v1658_v2  ;;  %v904_v33 = vmul.f32 %v888_v3, %v1661_v4 }
 0x28a   :  { %v1120_v59 = vpop.eup %1119  ;;  %v905_v23 = vmul.f32 %v889_v48, %v1671_v47  ;;  %v906_v7 = vmul.f32 %v890_v42, %v1679_v62  ;;  %v907_v18 = vmul.f32 %v891_v32, %v1690_v40  ;;  %v908_v51 = vmul.f32 %v892_v21, %v1701_v63 }
 0x28b   :  { %v442_v31 = vmul.f32 %v1120_v59, %v1724_v43  ;;  %v909_v15 = vmul.f32 %v893_v17, %v1707_v44  ;;  %v910_v55 = vmul.f32 %v1742_v46, %v902_v60  ;;  %v911_v54 = vmul.f32 %v1742_v46, %v903_v61 }
 0x28c   :  { %v912_v2 = vmul.f32 %v1742_v46, %v904_v33  ;;  %v913_v4 = vmul.f32 %v1742_v46, %v905_v23  ;;  %v914_v47 = vmul.f32 %v1742_v46, %v906_v7  ;;  %v915_v62 = vmul.f32 %v1742_v46, %v907_v18 }
 0x28d   :  { %v462_v40 = vmul.f32 %v1742_v46, %v442_v31  ;;  %v916_v63 = vmul.f32 %v1742_v46, %v908_v51  ;;  %v917_v43 = vmul.f32 %v1742_v46, %v909_v15  ;;  %v919_v44 = vadd.f32 %v1748_v20, %v911_v54 }
 0x28e   :  { %v1122_v22 = vpop.eup %1121  ;;  %v920_v56 = vadd.f32 %v1748_v20, %v912_v2  ;;  %v921_v50 = vadd.f32 %v1748_v20, %v913_v4  ;;  %v922_v29 = vadd.f32 %v1748_v20, %v914_v47  ;;  %v918_v52 = vadd.f32 %v1748_v20, %v910_v55 }
 0x28f   :  { %v482_v11 = vadd.f32 %v1748_v20, %v462_v40  ;;  %v444_v19 = vmul.f32 %v1122_v22, %v1728_v0  ;;  %v923_v9 = vadd.f32 %v1748_v20, %v915_v62  ;;  %v934_v57 = vrot.slane %v919_v44, 7 }
 0x290   :  { %v936_v26 = vrot.slane %v920_v56, 6  ;;  %v924_v6 = vadd.f32 %v1748_v20, %v916_v63  ;;  %v925_v25 = vadd.f32 %v1748_v20, %v917_v43  ;;  %v938_v49 = vrot.slane %v921_v50, 5 }
 0x291   :  { %498 = vst [vmem:[#allocation2 + $0x58] sm:$0xff] %v482_v11  ;;  %v464_v34 = vmul.f32 %v1742_v46, %v444_v19  ;;  %v935_v58 = vsel %vm808_vm2, %v934_v57, %v918_v52  ;;  %v940_v28 = vrot.slane %v922_v29, 4  ;;  %v942_v14 = vrot.slane %v923_v9, 3 }
 0x292   :  { %v1124_v10 = vpop.eup %1123  ;;  %v937_v53 = vsel %vm810_vm3, %v936_v26, %v935_v58  ;;  %v944_v41 = vrot.slane %v924_v6, 2  ;;  %v946_v16 = vrot.slane %v925_v25, 1 }
 0x293   :  { %v484_v0 = vadd.f32 %v1748_v20, %v464_v34  ;;  %v446_v39 = vmul.f32 %v1124_v10, %v1733_v24  ;;  %v939_v8 = vsel %vm812_vm4, %v938_v49, %v937_v53 }
 0x294   :  { %v941_v36 = vsel %vm814_vm5, %v940_v28, %v939_v8 }
 0x295   :  { %500 = vst [vmem:[#allocation2 + $0x68] sm:$0xff] %v484_v0  ;;  %v466_v35 = vmul.f32 %v1742_v46, %v446_v39  ;;  %v943_v27 = vsel %vm816_vm6, %v942_v14, %v941_v36 }
 0x296   :  { %v945_v38 = vsel %vm818_vm7, %v944_v41, %v943_v27 }
 0x297   :  { %v486_v24 = vadd.f32 %v1748_v20, %v466_v35  ;;  %v947_v30 = vsel %vm820_vm8, %v946_v16, %v945_v38 }
 0x298   :  { %949 = vst [vmem:[#allocation4] sm:$0xff] %v947_v30 }
 0x299   :  { %502 = vst [vmem:[#allocation2 + $0x78] sm:$0xff] %v486_v24 }
 0x29a   :  { %1136 = shalt.err (!%p1133_p4)
}
 0x29b   :  { %s1137_s2 = scalar_lea.hbm %s1863_s4, 2048 }
 0x29c   :  { %p1138_p5 = scmp.ne.s32.totalorder %s1863_s4, %s1137_s2  ;;  %p1141_p6 = scmp.lt.u32.totalorder %s1137_s2, %s1863_s4 }
 0x29e   :  { %p1143_p7 = pnand %p1141_p6, %p1138_p5 }
 0x2a0   :  { %1146 = shalt.err (!%p1143_p7)
}
 0x2a1   :  { %s1175_s18 = smov 128   ;;  %s1176_s19 = smov 8  }
 0x2a2   :  { %961 = dma.vmem_to_hbm [thread:$0]  %s956_s9, 2048, %s1863_s4, [#allocation3], %s1175_s18, %s1175_s18, %s1176_s19  }
 0x2a3   :  { %s1147_s22 = scalar_lea.vmem %s1828_s11, 128  ;;  %p1152_p9 = scmp.lt.s32.totalorder %s1828_s11, %s1828_s11 }
 0x2a4   :  { %p1148_p8 = scmp.ne.s32.totalorder %s1828_s11, %s1147_s22  ;;  %p1153_p10 = scmp.lt.s32.totalorder %s1147_s22, %s1147_s22 }
 0x2a6   :  { %p1154_p11 = por %p1153_p10, %p1152_p9 }
 0x2a8   :  { %p1155_p12 = pnand %p1154_p11, %p1148_p8 }
 0x2aa   :  { %1158 = shalt.err (!%p1155_p12)
}
 0x2ab   :  { %s1159_s25 = scalar_lea.hbm %s1864_s5, 128 }
 0x2ac   :  { %p1160_p13 = scmp.ne.s32.totalorder %s1864_s5, %s1159_s25  ;;  %p1163_p0 = scmp.lt.u32.totalorder %s1159_s25, %s1864_s5 }
 0x2ae   :  { %p1165_p1 = pnand %p1163_p0, %p1160_p13 }
 0x2b0   :  { %1168 = shalt.err (!%p1165_p1)
}
 0x2b1   :  { %971 = dma.vmem_to_hbm [thread:$0]  %s1828_s11, 128, %s1864_s5, [#allocation5]  }
 0x2b2   :  { %1169 = dma.done.wait [#allocation3], 2048  }
 0x2b3   :  { %1170 = vsyncadd [#allocation3], 4294965248 }
 0x2b4   :  { %1171 = dma.done.wait [#allocation5], 128  }
 0x2b5   :  { %1172 = vsyncadd [#allocation5], 4294967168 }
 0x2b6   :  { %978 = vsyncpa [#allocation3], 1 }
 0x2b7   :  { %979 = vsyncpa [#allocation5], 1 }

</bundles_post_ra>
